<compile_context>
chip_gen: v7x
topology: tpu7x:2x2x1
jax: 0.10.0
libtpu: 0.0.40
codegen_flags: <defaults>
</compile_context>

<pallas_src>
from functools import partial

import jax
import jax.numpy as jnp
from jax import lax
from jax.experimental import pallas as pl
from jax.experimental.pallas import tpu as pltpu


def controller_kernel(s_ref, w1b1_ref, w2b2_ref, g_ref, out_ref):
    # Slabs are [W ; b] stacked along the "in" axis: (S+1, S) and (S+1, A).
    s_dim = w1b1_ref.shape[0] - 1

    w1 = w1b1_ref[:s_dim, :]        # (S, S)
    b1 = w1b1_ref[s_dim:, :]        # (1, S)
    w2 = w2b2_ref[:s_dim, :]        # (S, A)
    b2 = w2b2_ref[s_dim:, :]        # (1, A)

    # hidden = relu(s @ W1 + b1)
    h = jnp.dot(s_ref[...], w1, preferred_element_type=jnp.float32) + b1
    h = jnp.maximum(h, 0.0)

    # scores = hidden @ W2 + b2
    scores = jnp.dot(h, w2, preferred_element_type=jnp.float32) + b2

    # Straight-through hard sample via the Gumbel-max trick:
    #   one_hot(argmax(softmax((log_softmax(scores) + g) / T))) == one_hot(argmax(scores + g))
    y = scores + g_ref[...]
    col = lax.broadcasted_iota(jnp.int32, y.shape, dimension=1)
    ymax = jnp.max(y, axis=-1, keepdims=True)
    sentinel = jnp.int32(y.shape[-1])
    first = jnp.min(jnp.where(y == ymax, col, sentinel), axis=-1, keepdims=True)
    out_ref[...] = (col == first).astype(out_ref.dtype)


@partial(jax.jit, static_argnames=("tile_n",))
def controller_forward(s_t, w1, b1, w2, b2, key, tile_n=8):
    N, S = s_t.shape
    A = w2.shape[1]
    assert N % tile_n == 0, "row count must be a multiple of tile_n"

    # Gumbel noise drawn host-side (works on TPU and in interpret mode), streamed per tile.
    gumbel = jax.random.gumbel(key, (N, A), dtype=jnp.float32)

    # Fold biases into the weight slabs -> fewer DMA descriptors.
    w1b1 = jnp.concatenate([w1, b1.reshape(1, S)], axis=0)   # (S+1, S)
    w2b2 = jnp.concatenate([w2, b2.reshape(1, A)], axis=0)   # (S+1, A)

    return pl.pallas_call(
        controller_kernel,
        out_shape=jax.ShapeDtypeStruct((N, A), jnp.float32),
        grid=(N // tile_n,),
        in_specs=[
            pl.BlockSpec((tile_n, S), lambda i: (i, 0)),     # s_t: streamed per step
            pl.BlockSpec((S + 1, S), lambda i: (0, 0)),      # W1|b1: resident in VMEM
            pl.BlockSpec((S + 1, A), lambda i: (0, 0)),      # W2|b2: resident in VMEM
            pl.BlockSpec((tile_n, A), lambda i: (i, 0)),     # gumbel: streamed per step
        ],
        out_specs=pl.BlockSpec((tile_n, A), lambda i: (i, 0)),
        compiler_params=pltpu.CompilerParams(dimension_semantics=("parallel",)),
    )(s_t, w1b1, w2b2, gumbel)


if __name__ == "__main__":
    key = jax.random.PRNGKey(0)
    k_s, k_w1, k_b1, k_w2, k_b2, k_g = jax.random.split(key, 6)

    # rows = batched timesteps/particles (the axis the grid streams over), s_dim, a_dim
    N, S, A = 64, 32, 16

    s_t = jax.random.normal(k_s, (N, S), dtype=jnp.float32)

    # PyTorch Linear params (W1 [S,S], b1 [S]; W2 [A,S], b2 [A]) stored transposed
    # ([in, out]) so the kernel computes x @ W directly on the MXU.
    w1 = jax.random.normal(k_w1, (S, S), dtype=jnp.float32) * (1.0 / jnp.sqrt(S))
    b1 = jax.random.normal(k_b1, (1, S), dtype=jnp.float32) * 0.01
    w2 = jax.random.normal(k_w2, (S, A), dtype=jnp.float32) * (1.0 / jnp.sqrt(S))
    b2 = jax.random.normal(k_b2, (1, A), dtype=jnp.float32) * 0.01

    a_t = controller_forward(s_t, w1, b1, w2, b2, k_g)
    a_t = jax.block_until_ready(a_t)

    # --- sanity: output is a valid one-hot per row ---------------------------
    assert a_t.shape == (N, A)
    assert jnp.allclose(jnp.sum(a_t, axis=-1), 1.0)
    assert bool(jnp.all((a_t == 0.0) | (a_t == 1.0)))

    # --- pure-JAX reference of the literal module formula (same Gumbel noise) --
    g = jax.random.gumbel(k_g, (N, A), dtype=jnp.float32)
    hidden = jnp.maximum(s_t @ w1 + b1, 0.0)
    scores = hidden @ w2 + b2
    probs = jax.nn.softmax(scores, axis=-1)
    relaxed = jax.nn.softmax((jnp.log(probs) + g) / 0.5, axis=-1)
    ref = jax.nn.one_hot(jnp.argmax(relaxed, axis=-1), A, dtype=jnp.float32)
    assert bool(jnp.array_equal(a_t, ref))

    print("KERNEL_OK")
</pallas_src>

<mosaic_0001>
module attributes {stable_mosaic.version = 11 : i64} {
  func.func @controller_kernel(%arg0: i32, %arg1: memref<8x32xf32, #tpu.memory_space<vmem>>, %arg2: memref<33x32xf32, #tpu.memory_space<vmem>>, %arg3: memref<33x16xf32, #tpu.memory_space<vmem>>, %arg4: memref<8x16xf32, #tpu.memory_space<vmem>>, %arg5: memref<8x16xf32, #tpu.memory_space<vmem>>) attributes {dimension_semantics = [#tpu.dimension_semantics<parallel>], iteration_bounds = array<i64: 8>, scalar_prefetch = 0 : i64, scratch_operands = 0 : i64, tpu.core_type = #tpu.core_type<tc>, window_params = [{transform_indices = @transform_0, window_bounds = array<i64: 8, 32>}, {pipeline_mode = #tpu.pipeline_mode<synchronous>, transform_indices = @transform_1, window_bounds = array<i64: 33, 32>}, {pipeline_mode = #tpu.pipeline_mode<synchronous>, transform_indices = @transform_2, window_bounds = array<i64: 33, 16>}, {transform_indices = @transform_3, window_bounds = array<i64: 8, 16>}, {transform_indices = @transform_4, window_bounds = array<i64: 8, 16>}]} {
    %c0 = arith.constant 0 : index
    %c0_0 = arith.constant 0 : index
    %0 = vector.load %arg2[%c0, %c0_0] : memref<33x32xf32, #tpu.memory_space<vmem>>, vector<32x32xf32>
    %c32 = arith.constant 32 : index
    %c0_1 = arith.constant 0 : index
    %1 = vector.load %arg2[%c32, %c0_1] : memref<33x32xf32, #tpu.memory_space<vmem>>, vector<1x32xf32>
    %c0_2 = arith.constant 0 : index
    %c0_3 = arith.constant 0 : index
    %2 = vector.load %arg3[%c0_2, %c0_3] : memref<33x16xf32, #tpu.memory_space<vmem>>, vector<32x16xf32>
    %c32_4 = arith.constant 32 : index
    %c0_5 = arith.constant 0 : index
    %3 = vector.load %arg3[%c32_4, %c0_5] : memref<33x16xf32, #tpu.memory_space<vmem>>, vector<1x16xf32>
    %c0_6 = arith.constant 0 : index
    %c0_7 = arith.constant 0 : index
    %4 = vector.load %arg1[%c0_6, %c0_7] : memref<8x32xf32, #tpu.memory_space<vmem>>, vector<8x32xf32>
    %cst = arith.constant dense<0.000000e+00> : vector<8x32xf32>
    %5 = tpu.matmul %4, %0, %cst {dimension_numbers = #tpu.dot_dimension_numbers<[1], [0], [0], [1], [0, 0, 1, 1], [], []>} : vector<8x32xf32>, vector<32x32xf32>, vector<8x32xf32> -> vector<8x32xf32>
    %6 = vector.broadcast %1 : vector<1x32xf32> to vector<8x32xf32>
    %7 = arith.addf %5, %6 : vector<8x32xf32>
    %cst_8 = arith.constant 0.000000e+00 : f32
    %8 = vector.broadcast %cst_8 : f32 to vector<8x32xf32>
    %9 = arith.maximumf %7, %8 : vector<8x32xf32>
    %cst_9 = arith.constant dense<0.000000e+00> : vector<8x16xf32>
    %10 = tpu.matmul %9, %2, %cst_9 {dimension_numbers = #tpu.dot_dimension_numbers<[1], [0], [0], [1], [0, 0, 1, 1], [], []>} : vector<8x32xf32>, vector<32x16xf32>, vector<8x16xf32> -> vector<8x16xf32>
    %11 = vector.broadcast %3 : vector<1x16xf32> to vector<8x16xf32>
    %12 = arith.addf %10, %11 : vector<8x16xf32>
    %c0_10 = arith.constant 0 : index
    %c0_11 = arith.constant 0 : index
    %13 = vector.load %arg4[%c0_10, %c0_11] : memref<8x16xf32, #tpu.memory_space<vmem>>, vector<8x16xf32>
    %14 = arith.addf %12, %13 : vector<8x16xf32>
    %15 = tpu.iota {dimensions = array<i32: 1>} : vector<8x16xi32>
    %cst_12 = arith.constant dense<0xFF800000> : vector<8xf32>
    %16 = vector.multi_reduction <maximumf>, %14, %cst_12 [1] : vector<8x16xf32> to vector<8xf32>
    %17 = vector.shape_cast %16 : vector<8xf32> to vector<8x1xf32>
    %18 = vector.broadcast %17 : vector<8x1xf32> to vector<8x16xf32>
    %19 = arith.cmpf oeq, %14, %18 : vector<8x16xf32>
    %c16_i32 = arith.constant 16 : i32
    %20 = vector.broadcast %c16_i32 : i32 to vector<8x16xi32>
    %21 = arith.select %19, %15, %20 : vector<8x16xi1>, vector<8x16xi32>
    %cst_13 = arith.constant dense<2147483647> : vector<8xi32>
    %22 = vector.multi_reduction <minsi>, %21, %cst_13 [1] : vector<8x16xi32> to vector<8xi32>
    %23 = vector.shape_cast %22 : vector<8xi32> to vector<8x1xi32>
    %24 = vector.broadcast %23 : vector<8x1xi32> to vector<8x16xi32>
    %25 = arith.cmpi eq, %15, %24 : vector<8x16xi32>
    %26 = arith.extui %25 : vector<8x16xi1> to vector<8x16xi32>
    %27 = arith.sitofp %26 : vector<8x16xi32> to vector<8x16xf32>
    %c0_14 = arith.constant 0 : index
    %c0_15 = arith.constant 0 : index
    %28 = vector.load %arg5[%c0_14, %c0_15] : memref<8x16xf32, #tpu.memory_space<vmem>>, vector<8x16xf32>
    tpu.vector_store %arg5[%c0_14, %c0_15], %27 {strides = array<i32>} : memref<8x16xf32, #tpu.memory_space<vmem>>, vector<8x16xf32>,
    return
  }
  func.func @transform_0(%arg0: i32) -> (i32, i32) {
    %c0_i32 = arith.constant 0 : i32
    %c0_i32_0 = arith.constant 0 : i32
    return %arg0, %c0_i32 : i32, i32
  }
  func.func @transform_1(%arg0: i32) -> (i32, i32) {
    %c0_i32 = arith.constant 0 : i32
    %c0_i32_0 = arith.constant 0 : i32
    %c0_i32_1 = arith.constant 0 : i32
    return %c0_i32, %c0_i32_0 : i32, i32
  }
  func.func @transform_2(%arg0: i32) -> (i32, i32) {
    %c0_i32 = arith.constant 0 : i32
    %c0_i32_0 = arith.constant 0 : i32
    %c0_i32_1 = arith.constant 0 : i32
    return %c0_i32, %c0_i32_0 : i32, i32
  }
  func.func @transform_3(%arg0: i32) -> (i32, i32) {
    %c0_i32 = arith.constant 0 : i32
    %c0_i32_0 = arith.constant 0 : i32
    return %arg0, %c0_i32 : i32, i32
  }
  func.func @transform_4(%arg0: i32) -> (i32, i32) {
    %c0_i32 = arith.constant 0 : i32
    %c0_i32_0 = arith.constant 0 : i32
    return %arg0, %c0_i32 : i32, i32
  }
}

</mosaic_0001>

<bundles_post_ra>
// kernel: controller_forward.1
= control target key start
LH: loop header
LB: loop body
LE: loop exit
PB: predicated region body
PF: predicated region fallthrough
CT: control target
= control target key end

     0   :  { %s577_s15 = smov 0   ;;  %s635_s0 = inlined_call_operand.vmem [shape: f32[64,32], index: 0, kind: input, shape index: {}]   ;;  %s636_s1 = inlined_call_operand.vmem [shape: f32[33,32], index: 1, kind: input, shape index: {}]   ;;  %s637_s2 = inlined_call_operand.vmem [shape: f32[33,16], index: 2, kind: input, shape index: {}]   ;;  %s638_s3 = inlined_call_operand.vmem [shape: f32[64,16], index: 3, kind: input, shape index: {}]   ;;  %s639_s4 = inlined_call_operand.vmem [shape: f32[64,16], index: 4, kind: output, shape index: {}]  }
   0x1 LB: > { %s471_s16 = sadd.s32 4294967295, %s547_s15   ;;  %p475_p0 = scmp.ge.s32.totalorder %s547_s15, 1  ;;  %s547_s15 = sphi %s577_s15, %s14_s15  }
   0x2   : > { %p170_p1 = scmp.lt.s32.totalorder %s547_s15, 9 }
   0x4   : > { %p171_p2 = pnand %p475_p0, %p170_p1 }
   0x5   : > { %v210_v0 = vld [vmem:[%s636_s1] sm:$0xff] (!%p171_p2)  ;;  %v211_v1 = vld [vmem:[%s636_s1 + $0x8] sm:$0xff] (!%p171_p2)  ;;  %v212_v2 = vld [vmem:[%s636_s1 + $0x10] sm:$0xff] (!%p171_p2)  ;;  %v549_v3 = vmov (!%p171_p2), 0.0|0.0   ;;  %vm550_vm0 = vmmov (!%p171_p2), 0   ;;  %v551_v6 = vmov (!%p171_p2), 0.0   ;;  %v379_v27 = vlaneseq (!%p171_p2) }
   0x6   : > { %174 = sbr.rel (%p171_p2) target bundleno = 892 (0x37c), region = 36  ;;  %518 = vmatprep.subr.bf16.mxu0 (!%p171_p2), %v549_v3  ;;  %v519_v4 = vpack.c.bf16 (!%p171_p2), %v211_v1, %v210_v0  ;;  %v213_v5 = vld [vmem:[%s636_s1 + $0x18] sm:$0xff] (!%p171_p2)  ;;  %504 = vmatprep.mubr.msk.f32.mxu0 (!%p171_p2), %vm550_vm0, %v551_v6  ;;  %p198_p3 = scmp.lt.s32.totalorder (!%p171_p2), %s471_s16, 7  ;;  %v215_v7 = vld [vmem:[%s637_s2] sm:$0xff] (!%p171_p2)  ;;  %v216_v8 = vld [vmem:[%s637_s2 + $0x8] sm:$0xff] (!%p171_p2)  ;;  %vm225_vm1 = vcmask (!%p171_p2), 261120  }
   0x7   : > { %524 = vmatprep.subr.bf16.mxu1 (!%p171_p2), %v549_v3  ;;  %v525_v9 = vpack.c.bf16 (!%p171_p2), %v216_v8, %v215_v7  ;;  %515 = vmatprep.mubr.msk.f32.mxu1 (!%p171_p2), %vm550_vm0, %v551_v6  ;;  %v522_v10 = vpack.c.bf16 (!%p171_p2), %v213_v5, %v212_v2  ;;  %v217_v12 = vld [vmem:[%s637_s2 + $0x10] sm:$0xff] (!%p171_p2)  ;;  %v218_v13 = vld [vmem:[%s637_s2 + $0x18] sm:$0xff] (!%p171_p2)  ;;  %v479_v15 = vld [vmem:[%s636_s1 + $0x20] ss:$0 sm:$0xff] (!%p171_p2)  ;;  %vm381_vm2 = vcmask (!%p171_p2), 130048   ;;  %v380_v28 = vand.u32 (!%p171_p2), 127, %v379_v27 }
   0x8   : > { %520 = vmatpush3.bf16.msra.mxu0 (!%p171_p2), %v519_v4  ;;  %v528_v14 = vpack.c.bf16 (!%p171_p2), %v218_v13, %v217_v12  ;;  %v481_v20 = vld [vmem:[%s637_s2 + $0x20] ss:$0 sm:$0xff] (!%p171_p2) }
   0x9   : > { %521 = vmatprep.subr.bf16.mxu0 (!%p171_p2), %v549_v3  ;;  %526 = vmatpush3.bf16.msra.mxu1 (!%p171_p2), %v525_v9 }
   0xa   : > { %527 = vmatprep.subr.bf16.mxu1 (!%p171_p2), %v549_v3 }
   0xc   : > { %523 = vmatpush3.bf16.msra.mxu0 (!%p171_p2), %v522_v10 }
   0xd   : > { %s641_s16 = smov (!%p198_p3, %s471_s16), 7  ;;  %529 = vmatpush3.bf16.msra.mxu1 %v528_v14 }
   0xe   : > { %s603_s29 = sshll.u32 %s641_s16, 3 }
   0xf   : > { %s201_s6 = scalar_lea.vmem %s635_s0, %s603_s29  ;;  %s205_s16 = scalar_lea.vmem %s638_s3, %s603_s29 }
  0x10   : > { %v220_v11 = vld [vmem:[%s201_s6] sm:$0xff]  ;;  %s209_s21 = scalar_lea.vmem %s639_s4, %s603_s29 }
  0x11   : > { %505 = vmatmul.mubr.msk.f32.vlgmr.msra.gmra.mrb[0].mxu0 %vm225_vm1, %v220_v11  ;;  %v377_v22 = vld [vmem:[%s205_s16] sm:$0xff] }
  0xe4   : > { %v295_v16 = vpop.f32.mrb[0].mxu0 }
  0xe5   : > { %v296_v17 = vadd.f32 %v479_v15, %v295_v16  ;;  %v506_v18 = vpop.f32.mrb[1].mxu0 }
  0xe7   : > { %v299_v19 = vmax.f32 %v296_v17, 0.0 }
  0xe9   : > { %516 = vmatmul.mubr.msk.f32.vlgmr.msra.gmra.mrb[0].mxu1 %vm225_vm1, %v299_v19 }
 0x1bc   : > { %v373_v21 = vpop.f32.mrb[0].mxu1 }
 0x1bd   : > { %v374_v23 = vadd.f32 %v481_v20, %v373_v21  ;;  %v517_v24 = vpop.f32.mrb[1].mxu1 }
 0x1bf   : > { %v378_v25 = vadd.f32 %v377_v22, %v374_v23 }
 0x1c1   : > { %v382_v26 = vsel %vm381_vm2, %v378_v25, -inf }
 0x1c2   : > { %383 = vmax.xlane.f32.xlu0 %v382_v26 }
 0x24f   : > { %v384_v29 = vpop.xlane.xlu0 %383 }
 0x250   : > { %vm385_vm3 = vcmp.eq.f32.partialorder %v378_v25, %v384_v29 }
 0x251   : > { %v386_v30 = vsel %vm385_vm3, %v380_v28, 16 }
 0x252   : > { %v387_v31 = vsel %vm381_vm2, %v386_v30, 2147483647 }
 0x253   : > { %v389_v32 = vshra.s32 %v387_v31, 16  ;;  %v388_v34 = vand.u32 65535, %v387_v31 }
 0x255   : > { %v391_v33 = vcvt.s32.f32 %v389_v32  ;;  %v390_v36 = vcvt.s32.f32 %v388_v34 }
 0x257   : > { %392 = vmin.xlane.f32.xlu0 %v391_v33 }
 0x2e4   : > { %v393_v35 = vpop.xlane.xlu0 %392 }
 0x2e5   : > { %vm394_vm4 = vcmp.eq.f32.partialorder %v391_v33, %v393_v35  ;;  %v399_v38 = vcvt.f32.s32 %v393_v35 }
 0x2e6   : > { %v395_v37 = vsel %vm394_vm4, %v390_v36, inf }
 0x2e7   : > { %396 = vmin.xlane.f32.xlu1 %v395_v37  ;;  %v400_v40 = vshll.u32 %v399_v38, 16 }
 0x374   : > { %v397_v39 = vpop.xlane.xlu1 %396 }
 0x375   : > { %v398_v41 = vcvt.f32.s32 %v397_v39 }
 0x377   : > { %v401_v42 = vadd.s32 %v400_v40, %v398_v41 }
 0x379   : > { %vm402_vm5 = vcmp.eq.s32.totalorder %v380_v28, %v401_v42 }
 0x37a   : > { %v483_v43 = vsel %vm402_vm5, 1.0, %v551_v6 }
 0x37b   : > { %405 = vst.msk [vmem:[%s209_s21] sm:$0xff] %vm381_vm2, %v483_v43 }
 0x37c PF: > { %s14_s15 = sadd.s32 1, %s547_s15  }
 0x37d   : > { %p11_p4 = scmp.ge.s32.totalorder %s14_s15, 10  }
 0x37f   :  { %13 = sbr.rel (!%p11_p4) target bundleno = 1 (0x1), region = 69 }

</bundles_post_ra>
